<compile_context>
chip_gen: v5e
topology: v5e:2x2
jax: 0.10.0
libtpu: 0.0.40
codegen_flags: <defaults>
</compile_context>

<pallas_src>
import functools

import jax
import jax.numpy as jnp
from jax.experimental import pallas as pl
from jax.experimental.pallas import tpu as pltpu

_LANE = 128
_UNROLL_ACTIONS_MAX = 8  # <= this many actions: unrolled select-add, no matmul


def _round_up(x, m):
    return (x + m - 1) // m * m


def _lane_pad(n):
    return _round_up(max(int(n), 1), _LANE)


def _tpu_generation():
    try:
        kind = jax.devices()[0].device_kind.lower()
    except Exception:
        return "unknown"
    if "v5 lite" in kind or "v5e" in kind or "v5lite" in kind:
        return "v5e"
    if "v6" in kind:
        return "v6e"
    if "v7" in kind or "7x" in kind:
        return "v7x"
    return "unknown"


def _fwd_dyn_kernel(x_ref, act_ref, w1e_ref, w1a_ref, b1_ref, w2_ref, b2_ref,
                    o_ref, *, action_dim, action_mode, mxu_dtype,
                    post_activation):
    # x_ref:   (tb, D)          embed tile
    # act_ref: (tb, 1)  int32   action ids
    # w1e_ref: (D,  H)          first-layer weight, embed rows
    # w1a_ref: (A', H)          first-layer weight, action rows
    # b1_ref:  (1,  H)  f32
    # w2_ref:  (H,  E)
    # b2_ref:  (1,  E)  f32
    # o_ref:   (tb, E)  f32
    x = x_ref[...].astype(mxu_dtype)
    acts = act_ref[...]                                     # (tb, 1) int32

    # First layer, embed part (MXU, f32 accumulate).
    h = jnp.dot(x, w1e_ref[...], preferred_element_type=jnp.float32)

    # First layer, one-hot(action) part.
    if action_mode == "select":
        # Small action_dim: unrolled select-add of the matching W1 row.
        for a in range(action_dim):
            sel = (acts == a).astype(jnp.float32)           # (tb, 1)
            row = w1a_ref[a:a + 1, :].astype(jnp.float32)   # (1, H)
            h = h + sel * row
    else:
        # Larger action_dim: build the one-hot on-chip (padded only to the
        # sublane quantum) and fold it through the MXU.
        ap = w1a_ref.shape[0]
        ids = jax.lax.broadcasted_iota(jnp.int32, (acts.shape[0], ap), 1)
        onehot = (ids == acts).astype(mxu_dtype)
        h = h + jnp.dot(onehot, w1a_ref[...],
                        preferred_element_type=jnp.float32)

    h = jnp.maximum(h + b1_ref[...], 0.0)                   # f32 bias + ReLU

    # Second layer.
    y = jnp.dot(h.astype(mxu_dtype), w2_ref[...],
                preferred_element_type=jnp.float32) + b2_ref[...]
    if post_activation == "relu":
        y = jnp.maximum(y, 0.0)
    elif post_activation == "tanh":
        y = jnp.tanh(y)
    o_ref[...] = y.astype(o_ref.dtype)


def prepare_gen_forward_dynamics_params(w1, b1, w2, b2, *, action_dim,
                                        use_bf16=False,
                                        unroll_actions_max=_UNROLL_ACTIONS_MAX):
    """One-time parameter prep (split / pad / cast) — hoisted out of the step.

    w1: (embed_dim + action_dim, H)   (in_features, out_features) == torch W.T
    b1: (H,),  w2: (H, embed_dim),  b2: (embed_dim,)
    """
    A = int(action_dim)
    D = int(w1.shape[0]) - A
    H = int(w1.shape[1])
    E = int(w2.shape[1])
    assert D > 0, "w1 must have embed_dim + action_dim rows"
    assert w2.shape[0] == H and b1.shape == (H,) and b2.shape == (E,)

    mxu_dtype = jnp.bfloat16 if use_bf16 else jnp.float32
    w1e = jnp.asarray(w1[:D], dtype=mxu_dtype)              # (D, H)
    if A <= unroll_actions_max:
        action_mode = "select"
        w1a = jnp.asarray(w1[D:], dtype=jnp.float32)        # (A, H), VPU adds
    else:
        action_mode = "matmul"
        sub = 16 if use_bf16 else 8                          # sublane quantum
        Ap = _round_up(A, sub)
        w1a = jnp.pad(jnp.asarray(w1[D:], dtype=jnp.float32),
                      ((0, Ap - A), (0, 0))).astype(mxu_dtype)
    b1p = jnp.asarray(b1, dtype=jnp.float32).reshape(1, H)
    w2p = jnp.asarray(w2, dtype=mxu_dtype)                   # (H, E)
    b2p = jnp.asarray(b2, dtype=jnp.float32).reshape(1, E)
    return dict(w1e=w1e, w1a=w1a, b1=b1p, w2=w2p, b2=b2p,
                D=D, A=A, H=H, E=E,
                action_mode=action_mode, mxu_dtype=mxu_dtype)


def gen_forward_dynamics_forward(embed, action, params, *, tile_b=None,
                                 post_activation=None,
                                 single_buffer_weights=None):
    """GenForwardDynamics.forward: LinearNetwork(cat([embed, one_hot(action)]))."""
    B, D = embed.shape
    assert D == params["D"], "embed feature dim mismatch"
    A, H, E = params["A"], params["H"], params["E"]
    w1e, w1a = params["w1e"], params["w1a"]
    b1p, w2p, b2p = params["b1"], params["w2"], params["b2"]
    action_mode = params["action_mode"]
    mxu_dtype = params["mxu_dtype"]

    embed_item = jnp.dtype(embed.dtype).itemsize
    w_item = jnp.dtype(mxu_dtype).itemsize
    w1a_item = jnp.dtype(w1a.dtype).itemsize

    # ---- generation-aware tiling policy -------------------------------
    gen = _tpu_generation()
    if gen == "v6e":     # 128 MiB physical VMEM, big tiles amortize overhead
        budget, cap, quantum, phys = 96 << 20, 2048, 256, 128 << 20
    elif gen == "v5e":   # stay well inside the 16 MiB default scoped VMEM
        budget, cap, quantum, phys = 13 << 20, 512, 128, 128 << 20
    elif gen == "v7x":   # 64 MiB / TC, keep per-core budget < ~48 MiB
        budget, cap, quantum, phys = 40 << 20, 1024, 128, 64 << 20
    else:
        budget, cap, quantum, phys = 24 << 20, 512, 8, 64 << 20

    # Resident weight bytes (lane-padded layout in VMEM).
    w_bytes = (D * _lane_pad(H) * w_item
               + w1a.shape[0] * _lane_pad(H) * w1a_item
               + 8 * _lane_pad(H) * 4
               + H * _lane_pad(E) * w_item
               + 8 * _lane_pad(E) * 4)
    if single_buffer_weights is None:
        single_buffer_weights = w_bytes > (4 << 20)
    w_bufs = 1 if single_buffer_weights else 2

    def vmem_bytes(tb):
        io = 2 * tb * (_lane_pad(D) * embed_item      # embed tile (2 buffers)
                       + _LANE * 4                     # (tb,1) i32 lane-padded
                       + _lane_pad(E) * 4)             # out tile
        tmp = 2 * tb * (_lane_pad(H) + _lane_pad(E)) * 4   # h / y temporaries
        return io + w_bufs * w_bytes + tmp

    if tile_b is None:
        if B >= quantum:
            tile_b = min(cap, _round_up(min(B, cap), quantum))
        else:
            tile_b = _round_up(B, 8)
        if gen == "v7x" and B > 8:
            # keep >= 2 grid steps so the "parallel" axis feeds both TCs
            tile_b = min(tile_b, _round_up((B + 1) // 2, 8))
    tile_b = max(8, _round_up(int(tile_b), 8))
    while tile_b > 8 and vmem_bytes(tile_b) > budget:
        tile_b = max(8, _round_up(tile_b // 2, 8))

    vmem_limit = int(min(phys - (8 << 20),
                         max(32 << 20,
                             int(vmem_bytes(tile_b) * 1.5) + (4 << 20))))

    # ---- batch padding to a whole number of tiles ----------------------
    Bp = _round_up(B, tile_b)
    act2d = action.astype(jnp.int32).reshape(B, 1)
    if Bp != B:
        embed = jnp.pad(embed, ((0, Bp - B), (0, 0)))
        act2d = jnp.pad(act2d, ((0, Bp - B), (0, 0)))
    grid = (Bp // tile_b,)

    def _weight_spec(shape):
        # Constant index map: single-buffer large weights to halve their VMEM.
        if single_buffer_weights:
            return pl.BlockSpec(shape, lambda i: (0, 0),
                                pipeline_mode=pl.Buffered(1))
        return pl.BlockSpec(shape, lambda i: (0, 0))

    kernel = functools.partial(_fwd_dyn_kernel,
                               action_dim=A,
                               action_mode=action_mode,
                               mxu_dtype=mxu_dtype,
                               post_activation=post_activation)

    flops = 2 * Bp * (D * H + H * E) + 2 * Bp * int(w1a.shape[0]) * H
    bytes_accessed = (Bp * D * embed_item + Bp * 4 + Bp * E * 4
                      + D * H * w_item + int(w1a.size) * w1a_item
                      + H * E * w_item + (H + E) * 4)

    out = pl.pallas_call(
        kernel,
        out_shape=jax.ShapeDtypeStruct((Bp, E), jnp.float32),
        grid_spec=pltpu.PrefetchScalarGridSpec(
            num_scalar_prefetch=0,
            grid=grid,
            in_specs=[
                pl.BlockSpec((tile_b, D), lambda i: (i, 0)),   # embed tile
                pl.BlockSpec((tile_b, 1), lambda i: (i, 0)),   # action ids
                _weight_spec(w1e.shape),                       # W1 embed rows
                _weight_spec(w1a.shape),                       # W1 action rows
                _weight_spec(b1p.shape),                       # b1
                _weight_spec(w2p.shape),                       # W2
                _weight_spec(b2p.shape),                       # b2
            ],
            out_specs=pl.BlockSpec((tile_b, E), lambda i: (i, 0)),
        ),
        compiler_params=pltpu.CompilerParams(
            dimension_semantics=("parallel",),
            vmem_limit_bytes=vmem_limit,
        ),
        cost_estimate=pl.CostEstimate(
            flops=int(flops), transcendentals=0,
            bytes_accessed=int(bytes_accessed)),
    )(embed, act2d, w1e, w1a, b1p, w2p, b2p)

    return out if Bp == B else out[:B]


def _reference(embed, action, w1, b1, w2, b2, action_dim):
    onehot = jax.nn.one_hot(action, action_dim, dtype=embed.dtype)
    x = jnp.concatenate([embed, onehot], axis=-1)
    h = jnp.maximum(
        jnp.dot(x, w1, precision=jax.lax.Precision.HIGHEST) + b1, 0.0)
    return jnp.dot(h, w2, precision=jax.lax.Precision.HIGHEST) + b2


if __name__ == "__main__":
    # Small shapes consistent with the module: embed_dim=32, action_dim=4,
    # hidden=64, batch=8.
    key = jax.random.PRNGKey(0)
    keys = jax.random.split(key, 10)

    B, embed_dim, action_dim, hidden = 8, 32, 4, 64
    D_in = embed_dim + action_dim

    embed = jax.random.normal(keys[0], (B, embed_dim), dtype=jnp.float32)
    action = jax.random.randint(keys[1], (B,), 0, action_dim, dtype=jnp.int32)
    # Deterministic parameter init (scaled normal, not a checkpoint load).
    w1 = jax.random.normal(keys[2], (D_in, hidden), dtype=jnp.float32) * 0.1
    b1 = jax.random.normal(keys[3], (hidden,), dtype=jnp.float32) * 0.01
    w2 = jax.random.normal(keys[4], (hidden, embed_dim), dtype=jnp.float32) * 0.1
    b2 = jax.random.normal(keys[5], (embed_dim,), dtype=jnp.float32) * 0.01

    # --- default f32 path (matches PyTorch numerics) -------------------
    params = prepare_gen_forward_dynamics_params(
        w1, b1, w2, b2, action_dim=action_dim, use_bf16=False)
    out = jax.block_until_ready(
        gen_forward_dynamics_forward(embed, action, params))
    ref = _reference(embed, action, w1, b1, w2, b2, action_dim)
    assert out.shape == (B, embed_dim)
    assert jnp.allclose(out, ref, atol=2e-2, rtol=2e-2), "f32 path mismatch"

    # --- multi-tile pipelined path (grid > 1, batch padding) -----------
    B2 = 20
    embed2 = jax.random.normal(keys[6], (B2, embed_dim), dtype=jnp.float32)
    action2 = jax.random.randint(keys[7], (B2,), 0, action_dim, dtype=jnp.int32)
    out2 = jax.block_until_ready(
        gen_forward_dynamics_forward(embed2, action2, params, tile_b=8))
    ref2 = _reference(embed2, action2, w1, b1, w2, b2, action_dim)
    assert out2.shape == (B2, embed_dim)
    assert jnp.allclose(out2, ref2, atol=2e-2, rtol=2e-2), "tiled mismatch"

    # --- bf16 MXU path (explicit opt-in, looser tolerance) -------------
    params_bf16 = prepare_gen_forward_dynamics_params(
        w1, b1, w2, b2, action_dim=action_dim, use_bf16=True)
    out3 = jax.block_until_ready(
        gen_forward_dynamics_forward(embed, action, params_bf16))
    assert jnp.allclose(out3, ref, atol=5e-2, rtol=5e-2), "bf16 path mismatch"

    # --- larger action_dim exercises the one-hot matmul fallback -------
    A2 = 20
    w1_big = jax.random.normal(keys[8], (embed_dim + A2, hidden),
                               dtype=jnp.float32) * 0.1
    action3 = jax.random.randint(keys[9], (B,), 0, A2, dtype=jnp.int32)
    params_big = prepare_gen_forward_dynamics_params(
        w1_big, b1, w2, b2, action_dim=A2, use_bf16=False)
    out4 = jax.block_until_ready(
        gen_forward_dynamics_forward(embed, action3, params_big))
    ref4 = _reference(embed, action3, w1_big, b1, w2, b2, A2)
    assert jnp.allclose(out4, ref4, atol=2e-2, rtol=2e-2), "one-hot matmul mismatch"

    # TODO(synk): gen_nets.LinearNetwork internals are not in the spec; it is
    # modelled here as Linear -> ReLU -> Linear with an optional post_activation.
    print("KERNEL_OK")
</pallas_src>

<mosaic_0001>
module attributes {stable_mosaic.version = 11 : i64} {
  func.func @_fwd_dyn_kernel(%arg0: i32, %arg1: memref<8x32xf32, #tpu.memory_space<vmem>>, %arg2: memref<8x1xi32, #tpu.memory_space<vmem>>, %arg3: memref<32x64xf32, #tpu.memory_space<vmem>>, %arg4: memref<4x64xf32, #tpu.memory_space<vmem>>, %arg5: memref<1x64xf32, #tpu.memory_space<vmem>>, %arg6: memref<64x32xf32, #tpu.memory_space<vmem>>, %arg7: memref<1x32xf32, #tpu.memory_space<vmem>>, %arg8: memref<8x32xf32, #tpu.memory_space<vmem>>) attributes {dimension_semantics = [#tpu.dimension_semantics<parallel>], iteration_bounds = array<i64: 1>, scalar_prefetch = 0 : i64, scratch_operands = 0 : i64, tpu.core_type = #tpu.core_type<tc>, window_params = [{transform_indices = @transform_0, window_bounds = array<i64: 8, 32>}, {transform_indices = @transform_1, window_bounds = array<i64: 8, 1>}, {pipeline_mode = #tpu.pipeline_mode<synchronous>, transform_indices = @transform_2, window_bounds = array<i64: 32, 64>}, {pipeline_mode = #tpu.pipeline_mode<synchronous>, transform_indices = @transform_3, window_bounds = array<i64: 4, 64>}, {pipeline_mode = #tpu.pipeline_mode<synchronous>, transform_indices = @transform_4, window_bounds = array<i64: 1, 64>}, {pipeline_mode = #tpu.pipeline_mode<synchronous>, transform_indices = @transform_5, window_bounds = array<i64: 64, 32>}, {pipeline_mode = #tpu.pipeline_mode<synchronous>, transform_indices = @transform_6, window_bounds = array<i64: 1, 32>}, {transform_indices = @transform_7, window_bounds = array<i64: 8, 32>}]} {
    %c0 = arith.constant 0 : index
    %c0_0 = arith.constant 0 : index
    %0 = vector.load %arg1[%c0, %c0_0] : memref<8x32xf32, #tpu.memory_space<vmem>>, vector<8x32xf32>
    %c0_1 = arith.constant 0 : index
    %c0_2 = arith.constant 0 : index
    %1 = vector.load %arg2[%c0_1, %c0_2] : memref<8x1xi32, #tpu.memory_space<vmem>>, vector<8x1xi32>
    %c0_3 = arith.constant 0 : index
    %c0_4 = arith.constant 0 : index
    %2 = vector.load %arg3[%c0_3, %c0_4] : memref<32x64xf32, #tpu.memory_space<vmem>>, vector<32x64xf32>
    %cst = arith.constant dense<0.000000e+00> : vector<8x64xf32>
    %3 = tpu.matmul %0, %2, %cst {dimension_numbers = #tpu.dot_dimension_numbers<[1], [0], [0], [1], [0, 0, 1, 1], [], []>} : vector<8x32xf32>, vector<32x64xf32>, vector<8x64xf32> -> vector<8x64xf32>
    %c0_i32 = arith.constant 0 : i32
    %4 = vector.broadcast %c0_i32 : i32 to vector<8x1xi32>
    %5 = arith.cmpi eq, %1, %4 : vector<8x1xi32>
    %6 = arith.extui %5 : vector<8x1xi1> to vector<8x1xi32>
    %7 = arith.sitofp %6 : vector<8x1xi32> to vector<8x1xf32>
    %c0_5 = arith.constant 0 : index
    %c0_6 = arith.constant 0 : index
    %8 = vector.load %arg4[%c0_5, %c0_6] : memref<4x64xf32, #tpu.memory_space<vmem>>, vector<1x64xf32>
    %9 = vector.broadcast %7 : vector<8x1xf32> to vector<8x64xf32>
    %10 = vector.broadcast %8 : vector<1x64xf32> to vector<8x64xf32>
    %11 = arith.mulf %9, %10 : vector<8x64xf32>
    %12 = arith.addf %3, %11 : vector<8x64xf32>
    %c1_i32 = arith.constant 1 : i32
    %13 = vector.broadcast %c1_i32 : i32 to vector<8x1xi32>
    %14 = arith.cmpi eq, %1, %13 : vector<8x1xi32>
    %15 = arith.extui %14 : vector<8x1xi1> to vector<8x1xi32>
    %16 = arith.sitofp %15 : vector<8x1xi32> to vector<8x1xf32>
    %c1 = arith.constant 1 : index
    %c0_7 = arith.constant 0 : index
    %17 = vector.load %arg4[%c1, %c0_7] : memref<4x64xf32, #tpu.memory_space<vmem>>, vector<1x64xf32>
    %18 = vector.broadcast %16 : vector<8x1xf32> to vector<8x64xf32>
    %19 = vector.broadcast %17 : vector<1x64xf32> to vector<8x64xf32>
    %20 = arith.mulf %18, %19 : vector<8x64xf32>
    %21 = arith.addf %12, %20 : vector<8x64xf32>
    %c2_i32 = arith.constant 2 : i32
    %22 = vector.broadcast %c2_i32 : i32 to vector<8x1xi32>
    %23 = arith.cmpi eq, %1, %22 : vector<8x1xi32>
    %24 = arith.extui %23 : vector<8x1xi1> to vector<8x1xi32>
    %25 = arith.sitofp %24 : vector<8x1xi32> to vector<8x1xf32>
    %c2 = arith.constant 2 : index
    %c0_8 = arith.constant 0 : index
    %26 = vector.load %arg4[%c2, %c0_8] : memref<4x64xf32, #tpu.memory_space<vmem>>, vector<1x64xf32>
    %27 = vector.broadcast %25 : vector<8x1xf32> to vector<8x64xf32>
    %28 = vector.broadcast %26 : vector<1x64xf32> to vector<8x64xf32>
    %29 = arith.mulf %27, %28 : vector<8x64xf32>
    %30 = arith.addf %21, %29 : vector<8x64xf32>
    %c3_i32 = arith.constant 3 : i32
    %31 = vector.broadcast %c3_i32 : i32 to vector<8x1xi32>
    %32 = arith.cmpi eq, %1, %31 : vector<8x1xi32>
    %33 = arith.extui %32 : vector<8x1xi1> to vector<8x1xi32>
    %34 = arith.sitofp %33 : vector<8x1xi32> to vector<8x1xf32>
    %c3 = arith.constant 3 : index
    %c0_9 = arith.constant 0 : index
    %35 = vector.load %arg4[%c3, %c0_9] : memref<4x64xf32, #tpu.memory_space<vmem>>, vector<1x64xf32>
    %36 = vector.broadcast %34 : vector<8x1xf32> to vector<8x64xf32>
    %37 = vector.broadcast %35 : vector<1x64xf32> to vector<8x64xf32>
    %38 = arith.mulf %36, %37 : vector<8x64xf32>
    %39 = arith.addf %30, %38 : vector<8x64xf32>
    %c0_10 = arith.constant 0 : index
    %c0_11 = arith.constant 0 : index
    %40 = vector.load %arg5[%c0_10, %c0_11] : memref<1x64xf32, #tpu.memory_space<vmem>>, vector<1x64xf32>
    %41 = vector.broadcast %40 : vector<1x64xf32> to vector<8x64xf32>
    %42 = arith.addf %39, %41 : vector<8x64xf32>
    %cst_12 = arith.constant 0.000000e+00 : f32
    %43 = vector.broadcast %cst_12 : f32 to vector<8x64xf32>
    %44 = arith.maximumf %42, %43 : vector<8x64xf32>
    %c0_13 = arith.constant 0 : index
    %c0_14 = arith.constant 0 : index
    %45 = vector.load %arg6[%c0_13, %c0_14] : memref<64x32xf32, #tpu.memory_space<vmem>>, vector<64x32xf32>
    %cst_15 = arith.constant dense<0.000000e+00> : vector<8x32xf32>
    %46 = tpu.matmul %44, %45, %cst_15 {dimension_numbers = #tpu.dot_dimension_numbers<[1], [0], [0], [1], [0, 0, 1, 1], [], []>} : vector<8x64xf32>, vector<64x32xf32>, vector<8x32xf32> -> vector<8x32xf32>
    %c0_16 = arith.constant 0 : index
    %c0_17 = arith.constant 0 : index
    %47 = vector.load %arg7[%c0_16, %c0_17] : memref<1x32xf32, #tpu.memory_space<vmem>>, vector<1x32xf32>
    %48 = vector.broadcast %47 : vector<1x32xf32> to vector<8x32xf32>
    %49 = arith.addf %46, %48 : vector<8x32xf32>
    %c0_18 = arith.constant 0 : index
    %c0_19 = arith.constant 0 : index
    %50 = vector.load %arg8[%c0_18, %c0_19] : memref<8x32xf32, #tpu.memory_space<vmem>>, vector<8x32xf32>
    tpu.vector_store %arg8[%c0_18, %c0_19], %49 {strides = array<i32>} : memref<8x32xf32, #tpu.memory_space<vmem>>, vector<8x32xf32>,
    return
  }
  func.func @transform_0(%arg0: i32) -> (i32, i32) {
    %c0_i32 = arith.constant 0 : i32
    %c0_i32_0 = arith.constant 0 : i32
    return %arg0, %c0_i32 : i32, i32
  }
  func.func @transform_1(%arg0: i32) -> (i32, i32) {
    %c0_i32 = arith.constant 0 : i32
    %c0_i32_0 = arith.constant 0 : i32
    return %arg0, %c0_i32 : i32, i32
  }
  func.func @transform_2(%arg0: i32) -> (i32, i32) {
    %c0_i32 = arith.constant 0 : i32
    %c0_i32_0 = arith.constant 0 : i32
    %c0_i32_1 = arith.constant 0 : i32
    return %c0_i32, %c0_i32_0 : i32, i32
  }
  func.func @transform_3(%arg0: i32) -> (i32, i32) {
    %c0_i32 = arith.constant 0 : i32
    %c0_i32_0 = arith.constant 0 : i32
    %c0_i32_1 = arith.constant 0 : i32
    return %c0_i32, %c0_i32_0 : i32, i32
  }
  func.func @transform_4(%arg0: i32) -> (i32, i32) {
    %c0_i32 = arith.constant 0 : i32
    %c0_i32_0 = arith.constant 0 : i32
    %c0_i32_1 = arith.constant 0 : i32
    return %c0_i32, %c0_i32_0 : i32, i32
  }
  func.func @transform_5(%arg0: i32) -> (i32, i32) {
    %c0_i32 = arith.constant 0 : i32
    %c0_i32_0 = arith.constant 0 : i32
    %c0_i32_1 = arith.constant 0 : i32
    return %c0_i32, %c0_i32_0 : i32, i32
  }
  func.func @transform_6(%arg0: i32) -> (i32, i32) {
    %c0_i32 = arith.constant 0 : i32
    %c0_i32_0 = arith.constant 0 : i32
    %c0_i32_1 = arith.constant 0 : i32
    return %c0_i32, %c0_i32_0 : i32, i32
  }
  func.func @transform_7(%arg0: i32) -> (i32, i32) {
    %c0_i32 = arith.constant 0 : i32
    %c0_i32_0 = arith.constant 0 : i32
    return %arg0, %c0_i32 : i32, i32
  }
}

</mosaic_0001>

<bundles_post_ra>
// kernel: tpu_custom_call.1
= control target key start
LH: loop header
LB: loop body
LE: loop exit
PB: predicated region body
PF: predicated region fallthrough
CT: control target
= control target key end

     0   :  { %v215_v2 = vmov 0   ;;  %vm44_vm2 = vcmask 261120   ;;  %v216_v5 = vmov 0.0   ;;  %s323_s0 = inlined_call_operand.vmem [shape: f32[8,32], index: 0, kind: input, shape index: {}]   ;;  %s324_s1 = inlined_call_operand.vmem [shape: s32[8,1], index: 1, kind: input, shape index: {}]   ;;  %s325_s2 = inlined_call_operand.vmem [shape: f32[32,64], index: 2, kind: input, shape index: {}]   ;;  %s326_s3 = inlined_call_operand.vmem [shape: f32[4,64], index: 3, kind: input, shape index: {}]   ;;  %s327_s4 = inlined_call_operand.vmem [shape: f32[1,64], index: 4, kind: input, shape index: {}]   ;;  %s328_s5 = inlined_call_operand.vmem [shape: f32[64,32], index: 5, kind: input, shape index: {}]   ;;  %s329_s6 = inlined_call_operand.vmem [shape: f32[1,32], index: 6, kind: input, shape index: {}]   ;;  %s330_s7 = inlined_call_operand.hbm [shape: f32[8,32], index: 7, kind: output, shape index: {}]  }
   0x1   :  { %v32_v0 = vld [vmem:[%s325_s2 + $0x18] sm:$0xff]  ;;  %v31_v1 = vld [vmem:[%s325_s2 + $0x10] sm:$0xff]  ;;  %172 = vset.pattern.permute.xlu0 %v215_v2  ;;  %v28_v3 = vld [vmem:[%s324_s1] sm:$0xff] }
   0x2   :  { %60 = vmatpush.msra.mxu0 %v32_v0  ;;  %v30_v4 = vld [vmem:[%s325_s2 + $0x8] sm:$0xff]  ;;  %vm33_vm0 = vcmp.eq.s32.totalorder %v28_v3, 0  ;;  %vm68_vm1 = vcmp.eq.s32.totalorder %v28_v3, 1  ;;  %v29_v8 = vld [vmem:[%s325_s2] sm:$0xff]  ;;  %vm80_vm3 = vcmp.eq.s32.totalorder %v28_v3, 2  ;;  %vm92_vm4 = vcmp.eq.s32.totalorder %v28_v3, 3 }
   0x3   :  { %v163_v6 = vsel %vm33_vm0, 1.0, %v216_v5  ;;  %v165_v7 = vsel %vm68_vm1, 1.0, %v216_v5  ;;  %v27_v9 = vld [vmem:[%s323_s0] sm:$0xff] }
   0x4   :  { %61 = vmatpush.msra.mxu0 %v31_v1  ;;  %v173_v10 = vpack.i.bf16 %v165_v7, %v163_v6 }
   0x6   :  { %62 = vmatpush.msra.mxu0 %v30_v4 }
   0x7   :  { %12 = vsyncpa [#allocation3], 0  ;;  %174 = vperm.xlu0 %172, %v173_v10   ;;  %v166_v11 = vsel %vm80_vm3, 1.0, %v216_v5  ;;  %v167_v12 = vsel %vm92_vm4, 1.0, %v216_v5  ;;  %v117_v14 = vld [vmem:[%s328_s5 + $0x38] sm:$0xff]  ;;  %v116_v15 = vld [vmem:[%s328_s5 + $0x30] sm:$0xff] }
   0x8   :  { %63 = vmatpush.msra.mxu0 %v29_v8  ;;  %v178_v13 = vpack.i.bf16 %v167_v12, %v166_v11  ;;  %134 = vmatpush.msra.mxu1 %v117_v14  ;;  %v115_v16 = vld [vmem:[%s328_s5 + $0x28] sm:$0xff]  ;;  %v114_v17 = vld [vmem:[%s328_s5 + $0x20] sm:$0xff]  ;;  %v113_v18 = vld [vmem:[%s328_s5 + $0x18] sm:$0xff]  ;;  %vm122_vm5 = vcmask 523264   ;;  %s154_s14 = sshll.u32 %s330_s7, 4  ;;  %s155_s14 = int_to_ptr.hbm [resolvable:$true] %s154_s14 }
   0x9   :  { %164 = vmatmul.msk.f32.vlgmr.msra.gmra.mxu0 %vm44_vm2, %v27_v9  ;;  %v112_v19 = vld [vmem:[%s328_s5 + $0x10] sm:$0xff]  ;;  %v111_v20 = vld [vmem:[%s328_s5 + $0x8] sm:$0xff]  ;;  %v110_v21 = vld [vmem:[%s328_s5] sm:$0xff] }
   0xa   :  { %135 = vmatpush.msra.mxu1 %v116_v15  ;;  %v186_v24 = vld [vmem:[%s326_s3] ss:$0 sm:$0xff]  ;;  %v183_v26 = vld [vmem:[%s326_s3 + $0x1] ss:$0 sm:$0xff]  ;;  %v184_v28 = vld [vmem:[%s326_s3 + $0x2] ss:$0 sm:$0xff] }
   0xb   :  { %v185_v33 = vld [vmem:[%s326_s3 + $0x3] ss:$0 sm:$0xff]  ;;  %v187_v40 = vld [vmem:[%s327_s4] ss:$0 sm:$0xff]  ;;  %s217_s3 = smov [#allocation2]  }
   0xc   :  { %136 = vmatpush.msra.mxu1 %v115_v16  ;;  %v188_v44 = vld [vmem:[%s329_s6] ss:$0 sm:$0xff]  ;;  %s152_s13 = sshll.u32 %s217_s3, 4  ;;  %s153_s13 = int_to_ptr.vmem [resolvable:$true] %s152_s13 }
   0xe   :  { %137 = vmatpush.msra.mxu1 %v114_v17 }
   0xf   :  { %179 = vperm.xlu0 %172, %v178_v13  }
  0x10   :  { %138 = vmatpush.msra.mxu1 %v113_v18 }
  0x12   :  { %139 = vmatpush.msra.mxu1 %v112_v19 }
  0x14   :  { %140 = vmatpush.msra.mxu1 %v111_v20 }
  0x16   :  { %141 = vmatpush.msra.mxu1 %v110_v21 }
  0x79   :  { %v175_v22 = vpop.permute.xlu0 %174 }
  0x7a   :  { %v176_v23 = vunpack.i.l.bf16 %v175_v22  ;;  %v177_v27 = vunpack.i.h.bf16 %v175_v22 }
  0x7c   :  { %v43_v30 = vmul.f32 %v186_v24, %v176_v23  ;;  %v78_v32 = vmul.f32 %v183_v26, %v177_v27 }
  0x81   :  { %v180_v25 = vpop.permute.xlu0 %179 }
  0x82   :  { %v181_v29 = vunpack.i.l.bf16 %v180_v25  ;;  %v182_v34 = vunpack.i.h.bf16 %v180_v25 }
  0x84   :  { %v90_v36 = vmul.f32 %v184_v28, %v181_v29  ;;  %v102_v38 = vmul.f32 %v185_v33, %v182_v34 }
  0x86   :  { %v65_v31 = vpop.f32.mrf.mxu0 }
  0x87   :  { %v66_v35 = vadd.f32 %v65_v31, %v43_v30 }
  0x89   :  { %v79_v37 = vadd.f32 %v78_v32, %v66_v35 }
  0x8b   :  { %v91_v39 = vadd.f32 %v90_v36, %v79_v37 }
  0x8d   :  { %v103_v41 = vadd.f32 %v102_v38, %v91_v39 }
  0x8f   :  { %v108_v42 = vadd.f32 %v187_v40, %v103_v41 }
  0x91   :  { %v109_v43 = vmax.f32 %v108_v42, 0.0 }
  0x93   :  { %168 = vmatmul.msk.f32.vlgmr.msra.gmra.mxu1 %vm122_vm5, %v109_v43 }
 0x110   :  { %v143_v45 = vpop.f32.mrf.mxu1 }
 0x111   :  { %v144_v46 = vadd.f32 %v188_v44, %v143_v45 }
 0x113   :  { %146 = vst.msk [vmem:[#allocation2] sm:$0xff] %vm44_vm2, %v144_v46 }
 0x114   :  { %157 = dma.vmem_to_hbm [thread:$0]  %s153_s13, 128, %s155_s14, [#allocation3]  }
 0x115   :  { %213 = dma.done.wait [#allocation3], 128  }
 0x116   :  { %214 = vsyncadd [#allocation3], 4294967168 }
 0x117   :  { %162 = vsyncpa [#allocation3], 1 }

</bundles_post_ra>
